<compile_context>
chip_gen: v7x
topology: tpu7x:2x2x1
jax: 0.10.0
libtpu: 0.0.40
codegen_flags: <defaults>
</compile_context>

<pallas_src>
import jax
import jax.numpy as jnp
from jax import lax
from jax.experimental import pallas as pl
from jax.experimental.pallas import tpu as pltpu

NUM_CLASSES = 101
VID_FEAT = 400
AUD_FEAT = 1024
CLS_PAD = 128          # 101 -> 128 lane-dense output / weight padding


def _round_up(x, m):
    return (x + m - 1) // m * m


def _cdiv(a, b):
    return (a + b - 1) // b


def _vmem_limit_bytes():
    """Generation-aware scoped-VMEM limit (v5e/v6e: 128 MiB, v7x: 64 MiB)."""
    try:
        cap = int(pltpu.get_tpu_info().vmem_capacity_bytes)
    except Exception:  # pragma: no cover - conservative fallback
        cap = 64 * 1024 * 1024
    return min(cap * 3 // 4, 96 * 1024 * 1024)


def _plan_time(T, C, b_tile, itemsize, packing, budget_bytes, override):
    """Pick (t_tile, n_blocks) for one stream.  No HBM padding is ever used:
    either the stream is fully resident (t_tile == T, one block) or it is
    tiled with an in-kernel mask on the ragged last block."""
    if override is not None:
        t_tile = max(1, min(int(override), T))
    elif b_tile * T * C * itemsize <= budget_bytes:
        t_tile = T                                   # fully resident per batch tile
    else:
        t_tile = 256                                 # big tiles amortize per-step overhead
        while t_tile > packing and 2 * b_tile * t_tile * C * itemsize > budget_bytes:
            t_tile //= 2
        t_tile = max(packing, min(t_tile, T))
    if t_tile < T:
        # Block second-minor dim must be a multiple of 8 (or equal the full dim).
        t_tile = min(T, _round_up(t_tile, 8))
    n_blocks = _cdiv(T, t_tile)
    return t_tile, n_blocks


# ----------------------------------------------------------------------------
# Pallas kernel: decoupled tiled time-sums -> mean + ReLU + (eval dropout) + FC
# ----------------------------------------------------------------------------
def _make_head_kernel(*, b_tile, k_steps,
                      tv_tile, nv, true_tv, vid_mxu,
                      ta_tile, na, true_ta, aud_mxu):
    inv_tv = 1.0 / float(true_tv)
    inv_ta = 1.0 / float(true_ta)

    def _block_time_sum(x, t_tile, use_mxu):
        # x: (b_tile, t_tile, C) -> (b_tile, C) float32 sum over time.
        if use_mxu:
            # MXU offload: block-diagonal ones selector.  Layout-preserving
            # reshape (t_tile is a multiple of the sublane packing).
            c = x.shape[-1]
            xf = x.reshape(b_tile * t_tile, c)
            col = lax.broadcasted_iota(jnp.int32, (b_tile, b_tile * t_tile), 1)
            row = lax.broadcasted_iota(jnp.int32, (b_tile, b_tile * t_tile), 0)
            band = jnp.logical_and(col >= row * t_tile, col < (row + 1) * t_tile)
            sel = band.astype(x.dtype)
            return jnp.dot(sel, xf, preferred_element_type=jnp.float32)
        return jnp.sum(x.astype(jnp.float32), axis=1)

    def _accumulate(x_ref, acc_ref, n_blocks, t_tile, true_t, use_mxu):
        t = pl.program_id(1)
        last = n_blocks - 1
        tail = true_t - last * t_tile        # valid rows in the last block

        def reduce_into(mask_tail):
            x = x_ref[...]
            if mask_tail:
                # Zero the out-of-range rows of the ragged last block so they
                # contribute nothing (and cannot poison the sum with garbage).
                rid = lax.broadcasted_iota(jnp.int32, x.shape, 1)
                x = jnp.where(rid < tail, x, jnp.zeros_like(x))
            acc_ref[...] += _block_time_sum(x, t_tile, use_mxu)

        if tail == t_tile and n_blocks == k_steps:
            reduce_into(False)               # fresh full block every grid step
        elif tail == t_tile:
            # Fewer blocks than grid steps: clamped index map repeats the last
            # block; accumulate it only while it is new.
            @pl.when(t < n_blocks)
            def _():
                reduce_into(False)
        else:
            @pl.when(t < last)
            def _():
                reduce_into(False)

            @pl.when(t == last)
            def _():
                reduce_into(True)

    def kernel(xv_ref, xa_ref, wv_ref, wa_ref, b_ref, o_ref,
               accv_ref, acca_ref):
        t = pl.program_id(1)

        @pl.when(t == 0)
        def _():
            accv_ref[...] = jnp.zeros_like(accv_ref)
            acca_ref[...] = jnp.zeros_like(acca_ref)

        _accumulate(xv_ref, accv_ref, nv, tv_tile, true_tv, vid_mxu)
        _accumulate(xa_ref, acca_ref, na, ta_tile, true_ta, aud_mxu)

        @pl.when(t == pl.num_programs(1) - 1)
        def _():
            # AvgPool1d(kernel=T) == mean over the TRUE T;
            # ReLU(concat) == concat(ReLU, ReLU); concat + Linear == split matmul.
            # TODO(synk): nn.Dropout(p=0.5) is the identity in eval mode only;
            # training-mode stochastic dropout is not reproduced here.
            v = jnp.maximum(accv_ref[...] * inv_tv, 0.0).astype(wv_ref.dtype)
            a = jnp.maximum(acca_ref[...] * inv_ta, 0.0).astype(wa_ref.dtype)
            acc = jnp.dot(v, wv_ref[...], preferred_element_type=jnp.float32)
            acc = acc + jnp.dot(a, wa_ref[...],
                                preferred_element_type=jnp.float32)
            o_ref[...] = (acc + b_ref[...]).astype(o_ref.dtype)

    return kernel


def i3d_sound_concat_head(x_vid_feat, x_audio_feat, w_fc, b_fc, *,
                          vid_t_tile=None, aud_t_tile=None):
    """Fused AvgPool-over-time + concat + ReLU + (eval) Dropout + Linear head.

    x_vid_feat:   (B, Tv, 400)  channel-last features (bf16 preferred, streamed as-is)
    x_audio_feat: (B, Ta, 1024) channel-last features
    w_fc: (101, 1424) nn.Linear weight;  b_fc: (101,)
    """
    B, Tv, Cv = x_vid_feat.shape
    Ba, Ta, Ca = x_audio_feat.shape
    assert B == Ba and Cv == VID_FEAT and Ca == AUD_FEAT

    vmem_limit = _vmem_limit_bytes()

    # ---- batch tiling (no padding: partial last batch block is row-local safe,
    #      its garbage rows never reach valid output rows). -----------------------
    if B <= 8:
        b_tile = B                       # full batch in one tile
    else:
        # Keep >= 2 batch tiles so the "parallel" axis spans both v7x TensorCores,
        # then grow the tile where it still divides B.
        b_tile = 8
        for cand in (16, 32):
            if B % cand == 0 and B // cand >= 2:
                b_tile = cand
    nb = _cdiv(B, b_tile)

    # ---- decoupled per-stream time tiling ---------------------------------------
    v_item = jnp.dtype(x_vid_feat.dtype).itemsize
    a_item = jnp.dtype(x_audio_feat.dtype).itemsize
    v_pack = 32 // v_item                # sublane packing (bf16: 16, f32: 8)
    a_pack = 32 // a_item

    stream_budget = max(4 * 1024 * 1024, vmem_limit - 8 * 1024 * 1024)
    v_budget = stream_budget * VID_FEAT // (VID_FEAT + AUD_FEAT)
    a_budget = stream_budget - v_budget

    tv_tile, nv = _plan_time(Tv, VID_FEAT, b_tile, v_item, v_pack, v_budget,
                             vid_t_tile)
    ta_tile, na = _plan_time(Ta, AUD_FEAT, b_tile, a_item, a_pack, a_budget,
                             aud_t_tile)
    k_steps = max(nv, na)

    # MXU time-reduce only when the collapse reshape is layout-preserving.
    vid_mxu = (tv_tile % v_pack == 0)
    aud_mxu = (ta_tile % a_pack == 0)

    # ---- weights: nn.Linear is x @ W.T + b.  Split at the concat boundary,
    #      transpose, pad classes 101 -> 128 (lane-dense output), bf16 weights
    #      (f32 MXU accumulation), f32 bias.  Small one-time prep. -----------------
    wv = jnp.zeros((VID_FEAT, CLS_PAD), jnp.bfloat16).at[:, :NUM_CLASSES].set(
        jnp.transpose(w_fc[:, :VID_FEAT]).astype(jnp.bfloat16))
    wa = jnp.zeros((AUD_FEAT, CLS_PAD), jnp.bfloat16).at[:, :NUM_CLASSES].set(
        jnp.transpose(w_fc[:, VID_FEAT:]).astype(jnp.bfloat16))
    b2 = jnp.zeros((1, CLS_PAD), jnp.float32).at[:, :NUM_CLASSES].set(
        b_fc.astype(jnp.float32))

    kernel = _make_head_kernel(
        b_tile=b_tile, k_steps=k_steps,
        tv_tile=tv_tile, nv=nv, true_tv=Tv, vid_mxu=vid_mxu,
        ta_tile=ta_tile, na=na, true_ta=Ta, aud_mxu=aud_mxu)

    out = pl.pallas_call(
        kernel,
        out_shape=jax.ShapeDtypeStruct((B, CLS_PAD), jnp.float32),
        grid_spec=pltpu.PrefetchScalarGridSpec(
            num_scalar_prefetch=0,
            grid=(nb, k_steps),
            in_specs=[
                # Clamped time index: when a stream has fewer time blocks than
                # grid steps, the repeated block index means no re-DMA and the
                # in-kernel pl.when skips the re-accumulate.
                pl.BlockSpec((b_tile, tv_tile, VID_FEAT),
                             lambda b, t: (b, jnp.minimum(t, nv - 1), 0)),
                pl.BlockSpec((b_tile, ta_tile, AUD_FEAT),
                             lambda b, t: (b, jnp.minimum(t, na - 1), 0)),
                # Constant index maps -> VMEM-resident weights / bias.
                # (pipeline_mode=pl.Buffered(1) would single-buffer these tiny
                #  constants; omitted for portability across jax versions.)
                pl.BlockSpec((VID_FEAT, CLS_PAD), lambda b, t: (0, 0)),
                pl.BlockSpec((AUD_FEAT, CLS_PAD), lambda b, t: (0, 0)),
                pl.BlockSpec((1, CLS_PAD), lambda b, t: (0, 0)),
            ],
            out_specs=pl.BlockSpec((b_tile, CLS_PAD), lambda b, t: (b, 0)),
            scratch_shapes=[
                pltpu.VMEM((b_tile, VID_FEAT), jnp.float32),
                pltpu.VMEM((b_tile, AUD_FEAT), jnp.float32),
            ],
        ),
        compiler_params=pltpu.CompilerParams(
            dimension_semantics=("parallel", "arbitrary"),
            vmem_limit_bytes=vmem_limit,
        ),
    )(x_vid_feat, x_audio_feat, wv, wa, b2)

    return out[:, :NUM_CLASSES]


# ----------------------------------------------------------------------------
# Deterministic stand-in backbones (plain-JAX glue; not the Pallas hot path).
# They emit bf16, channel-last (B, T, C) features directly — no extra wrapper
# pad/cast HBM round trip before the kernel.
# TODO(synk): the real I3D / SoundNet backbones are external submodules and are
# not reimplemented; these stubs only produce tensors of the correct shape.
# ----------------------------------------------------------------------------
def i3d_stub(x_vid, w_i3d):
    # x_vid: (B, 3, T, H, W)  ->  (B, T, 400) bf16
    feat = jnp.mean(x_vid, axis=(3, 4))                      # (B, 3, T)
    return jnp.einsum('bct,oc->bto', feat, w_i3d).astype(jnp.bfloat16)


def soundnet_stub(x_audio, w_snd):
    # x_audio: (B, 1, L)  ->  (B, L//4, 1024) bf16
    B, C, L = x_audio.shape
    feat = x_audio.reshape(B, C, L // 4, 4).mean(-1)          # (B, 1, Ta)
    return jnp.einsum('bct,oc->bto', feat, w_snd).astype(jnp.bfloat16)


# ----------------------------------------------------------------------------
# Pure-JAX reference of the head (channel-last inputs, f32 weights, HIGHEST).
# ----------------------------------------------------------------------------
def head_reference(x_vid_feat, x_audio_feat, w_fc, b_fc):
    v = jnp.mean(x_vid_feat.astype(jnp.float32), axis=1)      # (B, 400)
    a = jnp.mean(x_audio_feat.astype(jnp.float32), axis=1)    # (B, 1024)
    x = jnp.concatenate([v, a], axis=1)                       # (B, 1424)
    x = jnp.maximum(x, 0.0)
    return jnp.dot(x, jnp.transpose(w_fc).astype(jnp.float32),
                   precision=jax.lax.Precision.HIGHEST) + b_fc


if __name__ == "__main__":
    key = jax.random.PRNGKey(0)
    k_vid, k_aud, k_wi, k_ws, k_wfc, k_bfc = jax.random.split(key, 6)

    B, T_frames, H, W = 2, 8, 16, 16
    L_audio = 160                                   # -> Ta = 40 audio steps

    # raw inputs (PyTorch-style NC... layouts)
    x_vid = jax.random.normal(k_vid, (B, 3, T_frames, H, W), jnp.float32)
    x_audio = jax.random.normal(k_aud, (B, 1, L_audio), jnp.float32)

    # deterministic parameters
    w_i3d = jax.random.normal(k_wi, (VID_FEAT, 3), jnp.float32) * 5.0
    w_snd = jax.random.normal(k_ws, (AUD_FEAT, 1), jnp.float32) * 1.0
    w_fc = jax.random.normal(k_wfc, (NUM_CLASSES, VID_FEAT + AUD_FEAT),
                             jnp.float32) * 0.05
    b_fc = jax.random.normal(k_bfc, (NUM_CLASSES,), jnp.float32) * 0.1

    # backbone stand-ins (plain JAX glue), bf16 channel-last features
    x_vid_feat = i3d_stub(x_vid, w_i3d)              # (2, 8, 400)
    x_audio_feat = soundnet_stub(x_audio, w_snd)     # (2, 40, 1024)

    # Path 1: both streams fully VMEM-resident (single time block each).
    out1 = jax.block_until_ready(
        i3d_sound_concat_head(x_vid_feat, x_audio_feat, w_fc, b_fc))
    # Path 2: audio tiled over time (ragged last tile, MXU time-reduce),
    # video resident behind a clamped index map + pl.when guard.
    out2 = jax.block_until_ready(
        i3d_sound_concat_head(x_vid_feat, x_audio_feat, w_fc, b_fc,
                              vid_t_tile=16, aud_t_tile=16))

    ref = head_reference(x_vid_feat, x_audio_feat, w_fc, b_fc)

    assert out1.shape == (B, NUM_CLASSES), out1.shape
    assert out2.shape == (B, NUM_CLASSES), out2.shape
    err1 = float(jnp.max(jnp.abs(out1 - ref)))
    err2 = float(jnp.max(jnp.abs(out2 - ref)))
    assert jnp.allclose(out1, ref, atol=5e-3, rtol=5e-2), err1
    assert jnp.allclose(out2, ref, atol=5e-3, rtol=5e-2), err2
    assert jnp.allclose(out1, out2, atol=5e-3, rtol=5e-2), float(
        jnp.max(jnp.abs(out1 - out2)))

    print("KERNEL_OK")
</pallas_src>

<mosaic_0001>
module attributes {stable_mosaic.version = 11 : i64} {
  func.func @kernel(%arg0: i32, %arg1: i32, %arg2: memref<2x8x400xbf16, #tpu.memory_space<vmem>>, %arg3: memref<2x40x1024xbf16, #tpu.memory_space<vmem>>, %arg4: memref<400x128xbf16, #tpu.memory_space<vmem>>, %arg5: memref<1024x128xbf16, #tpu.memory_space<vmem>>, %arg6: memref<1x128xf32, #tpu.memory_space<vmem>>, %arg7: memref<2x128xf32, #tpu.memory_space<vmem>>, %arg8: memref<2x400xf32, #tpu.memory_space<vmem>>, %arg9: memref<2x1024xf32, #tpu.memory_space<vmem>>) attributes {dimension_semantics = [#tpu.dimension_semantics<parallel>, #tpu.dimension_semantics<arbitrary>], iteration_bounds = array<i64: 1, 1>, scalar_prefetch = 0 : i64, scratch_operands = 2 : i64, tpu.core_type = #tpu.core_type<tc>, window_params = [{transform_indices = @transform_0, window_bounds = array<i64: 2, 8, 400>}, {transform_indices = @transform_1, window_bounds = array<i64: 2, 40, 1024>}, {pipeline_mode = #tpu.pipeline_mode<synchronous>, transform_indices = @transform_2, window_bounds = array<i64: 400, 128>}, {pipeline_mode = #tpu.pipeline_mode<synchronous>, transform_indices = @transform_3, window_bounds = array<i64: 1024, 128>}, {pipeline_mode = #tpu.pipeline_mode<synchronous>, transform_indices = @transform_4, window_bounds = array<i64: 1, 128>}, {transform_indices = @transform_5, window_bounds = array<i64: 2, 128>}]} {
    %c0_i32 = arith.constant 0 : i32
    %0 = arith.cmpi eq, %arg1, %c0_i32 : i32
    %1 = arith.extui %0 : i1 to i32
    %c0_i32_0 = arith.constant 0 : i32
    %2 = arith.cmpi ne, %1, %c0_i32_0 : i32
    scf.if %2 {
      %cst_17 = arith.constant 0.000000e+00 : f32
      %18 = vector.broadcast %cst_17 : f32 to vector<2x400xf32>
      %c0_18 = arith.constant 0 : index
      %c0_19 = arith.constant 0 : index
      %19 = vector.load %arg8[%c0_18, %c0_19] : memref<2x400xf32, #tpu.memory_space<vmem>>, vector<2x400xf32>
      tpu.vector_store %arg8[%c0_18, %c0_19], %18 {strides = array<i32>} : memref<2x400xf32, #tpu.memory_space<vmem>>, vector<2x400xf32>,
      %cst_20 = arith.constant 0.000000e+00 : f32
      %20 = vector.broadcast %cst_20 : f32 to vector<2x1024xf32>
      %c0_21 = arith.constant 0 : index
      %c0_22 = arith.constant 0 : index
      %21 = vector.load %arg9[%c0_21, %c0_22] : memref<2x1024xf32, #tpu.memory_space<vmem>>, vector<2x1024xf32>
      tpu.vector_store %arg9[%c0_21, %c0_22], %20 {strides = array<i32>} : memref<2x1024xf32, #tpu.memory_space<vmem>>, vector<2x1024xf32>,
    } else {
    }
    %c0 = arith.constant 0 : index
    %c0_1 = arith.constant 0 : index
    %c0_2 = arith.constant 0 : index
    %3 = vector.load %arg2[%c0, %c0_1, %c0_2] : memref<2x8x400xbf16, #tpu.memory_space<vmem>>, vector<2x8x400xbf16>
    %c0_3 = arith.constant 0 : index
    %c0_4 = arith.constant 0 : index
    %4 = vector.load %arg8[%c0_3, %c0_4] : memref<2x400xf32, #tpu.memory_space<vmem>>, vector<2x400xf32>
    %5 = arith.extf %3 : vector<2x8x400xbf16> to vector<2x8x400xf32>
    %cst = arith.constant dense<0.000000e+00> : vector<2x400xf32>
    %6 = vector.multi_reduction <add>, %5, %cst [1] : vector<2x8x400xf32> to vector<2x400xf32>
    %7 = arith.addf %4, %6 : vector<2x400xf32>
    %c0_5 = arith.constant 0 : index
    %c0_6 = arith.constant 0 : index
    %8 = vector.load %arg8[%c0_5, %c0_6] : memref<2x400xf32, #tpu.memory_space<vmem>>, vector<2x400xf32>
    tpu.vector_store %arg8[%c0_5, %c0_6], %7 {strides = array<i32>} : memref<2x400xf32, #tpu.memory_space<vmem>>, vector<2x400xf32>,
    %c0_7 = arith.constant 0 : index
    %c0_8 = arith.constant 0 : index
    %c0_9 = arith.constant 0 : index
    %9 = vector.load %arg3[%c0_7, %c0_8, %c0_9] : memref<2x40x1024xbf16, #tpu.memory_space<vmem>>, vector<2x40x1024xbf16>
    %c0_10 = arith.constant 0 : index
    %c0_11 = arith.constant 0 : index
    %10 = vector.load %arg9[%c0_10, %c0_11] : memref<2x1024xf32, #tpu.memory_space<vmem>>, vector<2x1024xf32>
    %11 = arith.extf %9 : vector<2x40x1024xbf16> to vector<2x40x1024xf32>
    %cst_12 = arith.constant dense<0.000000e+00> : vector<2x1024xf32>
    %12 = vector.multi_reduction <add>, %11, %cst_12 [1] : vector<2x40x1024xf32> to vector<2x1024xf32>
    %13 = arith.addf %10, %12 : vector<2x1024xf32>
    %c0_13 = arith.constant 0 : index
    %c0_14 = arith.constant 0 : index
    %14 = vector.load %arg9[%c0_13, %c0_14] : memref<2x1024xf32, #tpu.memory_space<vmem>>, vector<2x1024xf32>
    tpu.vector_store %arg9[%c0_13, %c0_14], %13 {strides = array<i32>} : memref<2x1024xf32, #tpu.memory_space<vmem>>, vector<2x1024xf32>,
    %c0_i32_15 = arith.constant 0 : i32
    %15 = arith.cmpi eq, %arg1, %c0_i32_15 : i32
    %16 = arith.extui %15 : i1 to i32
    %c0_i32_16 = arith.constant 0 : i32
    %17 = arith.cmpi ne, %16, %c0_i32_16 : i32
    scf.if %17 {
      %c0_17 = arith.constant 0 : index
      %c0_18 = arith.constant 0 : index
      %18 = vector.load %arg8[%c0_17, %c0_18] : memref<2x400xf32, #tpu.memory_space<vmem>>, vector<2x400xf32>
      %cst_19 = arith.constant 1.250000e-01 : f32
      %19 = vector.broadcast %cst_19 : f32 to vector<2x400xf32>
      %20 = arith.mulf %18, %19 : vector<2x400xf32>
      %cst_20 = arith.constant 0.000000e+00 : f32
      %21 = vector.broadcast %cst_20 : f32 to vector<2x400xf32>
      %22 = arith.maximumf %20, %21 : vector<2x400xf32>
      %23 = arith.truncf %22 : vector<2x400xf32> to vector<2x400xbf16>
      %c0_21 = arith.constant 0 : index
      %c0_22 = arith.constant 0 : index
      %24 = vector.load %arg9[%c0_21, %c0_22] : memref<2x1024xf32, #tpu.memory_space<vmem>>, vector<2x1024xf32>
      %cst_23 = arith.constant 2.500000e-02 : f32
      %25 = vector.broadcast %cst_23 : f32 to vector<2x1024xf32>
      %26 = arith.mulf %24, %25 : vector<2x1024xf32>
      %cst_24 = arith.constant 0.000000e+00 : f32
      %27 = vector.broadcast %cst_24 : f32 to vector<2x1024xf32>
      %28 = arith.maximumf %26, %27 : vector<2x1024xf32>
      %29 = arith.truncf %28 : vector<2x1024xf32> to vector<2x1024xbf16>
      %c0_25 = arith.constant 0 : index
      %c0_26 = arith.constant 0 : index
      %30 = vector.load %arg4[%c0_25, %c0_26] : memref<400x128xbf16, #tpu.memory_space<vmem>>, vector<400x128xbf16>
      %cst_27 = arith.constant dense<0.000000e+00> : vector<2x128xf32>
      %31 = tpu.matmul %23, %30, %cst_27 {dimension_numbers = #tpu.dot_dimension_numbers<[1], [0], [0], [1], [0, 0, 1, 1], [], []>} : vector<2x400xbf16>, vector<400x128xbf16>, vector<2x128xf32> -> vector<2x128xf32>
      %c0_28 = arith.constant 0 : index
      %c0_29 = arith.constant 0 : index
      %32 = vector.load %arg5[%c0_28, %c0_29] : memref<1024x128xbf16, #tpu.memory_space<vmem>>, vector<1024x128xbf16>
      %cst_30 = arith.constant dense<0.000000e+00> : vector<2x128xf32>
      %33 = tpu.matmul %29, %32, %cst_30 {dimension_numbers = #tpu.dot_dimension_numbers<[1], [0], [0], [1], [0, 0, 1, 1], [], []>} : vector<2x1024xbf16>, vector<1024x128xbf16>, vector<2x128xf32> -> vector<2x128xf32>
      %34 = arith.addf %31, %33 : vector<2x128xf32>
      %c0_31 = arith.constant 0 : index
      %c0_32 = arith.constant 0 : index
      %35 = vector.load %arg6[%c0_31, %c0_32] : memref<1x128xf32, #tpu.memory_space<vmem>>, vector<1x128xf32>
      %36 = vector.broadcast %35 : vector<1x128xf32> to vector<2x128xf32>
      %37 = arith.addf %34, %36 : vector<2x128xf32>
      %c0_33 = arith.constant 0 : index
      %c0_34 = arith.constant 0 : index
      %38 = vector.load %arg7[%c0_33, %c0_34] : memref<2x128xf32, #tpu.memory_space<vmem>>, vector<2x128xf32>
      tpu.vector_store %arg7[%c0_33, %c0_34], %37 {strides = array<i32>} : memref<2x128xf32, #tpu.memory_space<vmem>>, vector<2x128xf32>,
    } else {
    }
    return
  }
  func.func @transform_0(%arg0: i32, %arg1: i32) -> (i32, i32, i32) {
    %c0_i32 = arith.constant 0 : i32
    %0 = arith.minsi %arg1, %c0_i32 : i32
    %c0_i32_0 = arith.constant 0 : i32
    %c0_i32_1 = arith.constant 0 : i32
    return %arg0, %0, %c0_i32_0 : i32, i32, i32
  }
  func.func @transform_1(%arg0: i32, %arg1: i32) -> (i32, i32, i32) {
    %c0_i32 = arith.constant 0 : i32
    %0 = arith.minsi %arg1, %c0_i32 : i32
    %c0_i32_0 = arith.constant 0 : i32
    %c0_i32_1 = arith.constant 0 : i32
    return %arg0, %0, %c0_i32_0 : i32, i32, i32
  }
  func.func @transform_2(%arg0: i32, %arg1: i32) -> (i32, i32) {
    %c0_i32 = arith.constant 0 : i32
    %c0_i32_0 = arith.constant 0 : i32
    %c0_i32_1 = arith.constant 0 : i32
    return %c0_i32, %c0_i32_0 : i32, i32
  }
  func.func @transform_3(%arg0: i32, %arg1: i32) -> (i32, i32) {
    %c0_i32 = arith.constant 0 : i32
    %c0_i32_0 = arith.constant 0 : i32
    %c0_i32_1 = arith.constant 0 : i32
    return %c0_i32, %c0_i32_0 : i32, i32
  }
  func.func @transform_4(%arg0: i32, %arg1: i32) -> (i32, i32) {
    %c0_i32 = arith.constant 0 : i32
    %c0_i32_0 = arith.constant 0 : i32
    %c0_i32_1 = arith.constant 0 : i32
    return %c0_i32, %c0_i32_0 : i32, i32
  }
  func.func @transform_5(%arg0: i32, %arg1: i32) -> (i32, i32) {
    %c0_i32 = arith.constant 0 : i32
    %c0_i32_0 = arith.constant 0 : i32
    return %arg0, %c0_i32 : i32, i32
  }
}

</mosaic_0001>

<bundles_post_ra>
// kernel: tpu_custom_call.1
= control target key start
LH: loop header
LB: loop body
LE: loop exit
PB: predicated region body
PF: predicated region fallthrough
CT: control target
= control target key end

     0   :  { %10 = vsyncpa [#allocation5], 0  ;;  %s2402_s0 = inlined_call_operand.hbm [shape: bf16[2,8,400], index: 0, kind: input, shape index: {}]   ;;  %s2403_s1 = inlined_call_operand.hbm [shape: bf16[2,40,1024], index: 1, kind: input, shape index: {}]   ;;  %s2404_s2 = inlined_call_operand.hbm [shape: bf16[400,128], index: 2, kind: input, shape index: {}]   ;;  %s2405_s3 = inlined_call_operand.hbm [shape: bf16[1024,128], index: 3, kind: input, shape index: {}]   ;;  %s2406_s4 = inlined_call_operand.vmem [shape: f32[1,128], index: 4, kind: input, shape index: {}]   ;;  %s2407_s5 = inlined_call_operand.hbm [shape: f32[2,128], index: 5, kind: output, shape index: {}]  }
   0x1   :  { %11 = vsyncpa [#allocation8], 0 }
   0x2   :  { %12 = vsyncpa [#allocation11], 0 }
   0x3   :  { %13 = vsyncpa [#allocation6], 0  ;;  %s2099_s18 = smov [#allocation7]   ;;  %s1981_s22 = scalar_lea.hbm %s2403_s1, 5120 }
   0x4   :  { %s31_s19 = sshll.u32 %s2099_s18, 4  ;;  %p1982_p0 = scmp.ne.s32.totalorder %s2403_s1, %s1981_s22  ;;  %s32_s19 = int_to_ptr.vmem [resolvable:$true] %s31_s19 }
   0x5   :  { %p1985_p1 = scmp.lt.u32.totalorder %s1981_s22, %s2403_s1 }
   0x7   :  { %p1987_p2 = pnand %p1985_p1, %p1982_p0 }
   0x9   :  { %1990 = shalt.err (!%p1987_p2)
}
   0xa   :  { %s1991_s27 = scalar_lea.vmem %s32_s19, 5120  ;;  %p1996_p4 = scmp.lt.s32.totalorder %s32_s19, %s32_s19 }
   0xb   :  { %p1992_p3 = scmp.ne.s32.totalorder %s32_s19, %s1991_s27  ;;  %p1997_p5 = scmp.lt.s32.totalorder %s1991_s27, %s1991_s27 }
   0xd   :  { %p1998_p6 = por %p1997_p5, %p1996_p4 }
   0xf   :  { %p1999_p7 = pnand %p1998_p6, %p1992_p3 }
  0x11   :  { %2002 = shalt.err (!%p1999_p7)
}
  0x12   :  { %s2100_s28 = smov 512   ;;  %s2101_s29 = smov 32  }
  0x13   :  { %37 = dma.hbm_to_vmem [thread:$0]  %s2403_s1, 5120, %s32_s19, [#allocation8], %s2100_s28, %s2100_s28, %s2101_s29  }
  0x14   :  { %s2102_s7 = smov [#allocation4]   ;;  %s2003_s11 = scalar_lea.hbm %s2402_s0, 512 }
  0x15   :  { %s19_s8 = sshll.u32 %s2102_s7, 4  ;;  %p2004_p8 = scmp.ne.s32.totalorder %s2402_s0, %s2003_s11  ;;  %s20_s8 = int_to_ptr.vmem [resolvable:$true] %s19_s8 }
  0x16   :  { %p2007_p9 = scmp.lt.u32.totalorder %s2003_s11, %s2402_s0 }
  0x18   :  { %p2009_p10 = pnand %p2007_p9, %p2004_p8 }
  0x1a   :  { %2012 = shalt.err (!%p2009_p10)
}
  0x1b   :  { %s2013_s16 = scalar_lea.vmem %s20_s8, 512  ;;  %p2018_p12 = scmp.lt.s32.totalorder %s20_s8, %s20_s8 }
  0x1c   :  { %p2014_p11 = scmp.ne.s32.totalorder %s20_s8, %s2013_s16  ;;  %p2019_p13 = scmp.lt.s32.totalorder %s2013_s16, %s2013_s16 }
  0x1e   :  { %p2020_p0 = por %p2019_p13, %p2018_p12 }
  0x20   :  { %p2021_p1 = pnand %p2020_p0, %p2014_p11 }
  0x22   :  { %2024 = shalt.err (!%p2021_p1)
}
  0x23   :  { %s2103_s1 = smov 256   ;;  %s2104_s17 = smov 16  }
  0x24   :  { %25 = dma.hbm_to_vmem [thread:$0]  %s2402_s0, 512, %s20_s8, [#allocation5], %s2103_s1, %s2103_s1, %s2104_s17  }
  0x25   :  { %s2105_s20 = smov [#allocation9]   ;;  %s2025_s24 = scalar_lea.hbm %s2404_s2, 3200 }
  0x26   :  { %s43_s21 = sshll.u32 %s2105_s20, 4  ;;  %p2026_p2 = scmp.ne.s32.totalorder %s2404_s2, %s2025_s24  ;;  %s44_s21 = int_to_ptr.vmem [resolvable:$true] %s43_s21 }
  0x27   :  { %p2029_p3 = scmp.lt.u32.totalorder %s2025_s24, %s2404_s2 }
  0x29   :  { %p2031_p4 = pnand %p2029_p3, %p2026_p2 }
  0x2b   :  { %2034 = shalt.err (!%p2031_p4)
}
  0x2c   :  { %s2035_s29 = scalar_lea.vmem %s44_s21, 3200  ;;  %p2040_p6 = scmp.lt.s32.totalorder %s44_s21, %s44_s21 }
  0x2d   :  { %p2036_p5 = scmp.ne.s32.totalorder %s44_s21, %s2035_s29  ;;  %p2041_p7 = scmp.lt.s32.totalorder %s2035_s29, %s2035_s29 }
  0x2f   :  { %p2042_p8 = por %p2041_p7, %p2040_p6 }
  0x31   :  { %p2043_p9 = pnand %p2042_p8, %p2036_p5 }
  0x33   :  { %2046 = shalt.err (!%p2043_p9)
}
  0x34   :  { %s2106_s0 = smov 64   ;;  %s2107_s30 = smov 4  }
  0x35   :  { %49 = dma.hbm_to_vmem [thread:$0]  %s2404_s2, 3200, %s44_s21, [#allocation8], %s2106_s0, %s2106_s0, %s2107_s30  }
  0x36   :  { %s2108_s8 = smov [#allocation10]   ;;  %s2047_s12 = scalar_lea.hbm %s2405_s3, 8192 }
  0x37   :  { %s55_s9 = sshll.u32 %s2108_s8, 4  ;;  %p2048_p10 = scmp.ne.s32.totalorder %s2405_s3, %s2047_s12  ;;  %s56_s9 = int_to_ptr.vmem [resolvable:$true] %s55_s9 }
  0x38   :  { %p2051_p11 = scmp.lt.u32.totalorder %s2047_s12, %s2405_s3 }
  0x3a   :  { %p2053_p12 = pnand %p2051_p11, %p2048_p10 }
  0x3c   :  { %2056 = shalt.err (!%p2053_p12)
}
  0x3d   :  { %s2057_s1 = scalar_lea.vmem %s56_s9, 8192  ;;  %p2062_p0 = scmp.lt.s32.totalorder %s56_s9, %s56_s9 }
  0x3e   :  { %p2058_p13 = scmp.ne.s32.totalorder %s56_s9, %s2057_s1  ;;  %p2063_p1 = scmp.lt.s32.totalorder %s2057_s1, %s2057_s1 }
  0x40   :  { %p2064_p2 = por %p2063_p1, %p2062_p0 }
  0x42   :  { %p2065_p3 = pnand %p2064_p2, %p2058_p13 }
  0x44   :  { %2068 = shalt.err (!%p2065_p3)
}
  0x45   :  { %61 = dma.hbm_to_vmem [thread:$0]  %s2405_s3, 8192, %s56_s9, [#allocation11], %s2106_s0, %s2106_s0, %s2107_s30  }
  0x46   :  { %2091 = dma.done.wait [#allocation5], 512  }
  0x47   :  { %2092 = vsyncadd [#allocation5], 4294966784 }
  0x48   :  { %2093 = dma.done.wait [#allocation8], 8320  }
  0x49   :  { %2094 = vsyncadd [#allocation8], 4294958976 }
  0x4a   :  { %2095 = dma.done.wait [#allocation11], 8192  }
  0x4b   :  { %2096 = vsyncadd [#allocation11], 4294959104  ;;  %vm81_vm0 = vcmask 1041408   ;;  %vm82_vm1 = vcmask 1043458   ;;  %vm84_vm2 = vcmask 1045508   ;;  %vm86_vm3 = vcmask 130054  }
  0x4c   :  { %vm83_vm4 = vmor %vm82_vm1, %vm81_vm0  ;;  %v2109_v1 = vmov 0.0   ;;  %v1892_v2 = vld [vmem:[#allocation10 + $0x40] sm:$0xff]   ;;  %v1896_v6 = vld [vmem:[#allocation10 + $0x48] sm:$0xff]   ;;  %v2110_v27 = vmov 1983009808   ;;  %v168_v29 = vlaneseq  ;;  %vm122_vm7 = vcmask 130048  }
  0x4d   :  { %vm85_vm5 = vmor %vm84_vm2, %vm83_vm4  ;;  %v1893_v3 = vld [vmem:[#allocation10] sm:$0xff]   ;;  %1768 = vmatprep.subr.bf16.mxu0 %v1892_v2  ;;  %v1897_v7 = vld [vmem:[#allocation10 + $0x8] sm:$0xff]   ;;  %v166_v28 = vunpack.c.l.s4 %v2110_v27  ;;  %vm202_vm8 = vcmask 1041409   ;;  %vm204_vm9 = vcmask 1043459   ;;  %vm206_vm10 = vcmask 1045509   ;;  %s2112_s19 = smov [#allocation12]  }
  0x4e   :  { %vm2191_vm6 = vmor %vm86_vm3, %vm85_vm5  ;;  %v1894_v4 = vld [vmem:[#allocation10 + $0xc0] sm:$0xff]   ;;  %1769 = vmatpush3.bf16.msra.mxu0 %v1893_v3  ;;  %v1898_v8 = vld [vmem:[#allocation10 + $0xc8] sm:$0xff]   ;;  %v169_v35 = vshrl.u32 %v168_v29, 7  ;;  %vm208_vm11 = vcmask 1047559   ;;  %s1666_s20 = sshll.u32 %s2112_s19, 4  ;;  %s1667_s20 = int_to_ptr.vmem [resolvable:$true] %s1666_s20 }
  0x4f   :  { %88 = vst.msk [vmem:[#allocation2] sm:$0xff] %vm2191_vm6, %v2109_v1  ;;  %v1895_v5 = vld [vmem:[#allocation10 + $0x80] sm:$0xff]   ;;  %1790 = vmatprep.subr.bf16.mxu1 %v1894_v4  ;;  %1770 = vmatprep.subr.bf16.mxu0 %v1896_v6  ;;  %v1899_v9 = vld [vmem:[#allocation10 + $0x88] sm:$0xff]   ;;  %v1900_v10 = vld [vmem:[#allocation10 + $0x50] sm:$0xff]   ;;  %v167_v34 = vunpack.c.0.s8 %v166_v28  ;;  %s2069_s21 = scalar_lea.vmem %s1667_s20, 32  ;;  %p2074_p5 = scmp.lt.s32.totalorder %s1667_s20, %s1667_s20 }
  0x50   :  { %1791 = vmatpush3.bf16.msra.mxu1 %v1895_v5  ;;  %v1901_v11 = vld [vmem:[#allocation10 + $0x10] sm:$0xff]   ;;  %v1904_v14 = vld [vmem:[#allocation10 + $0x58] sm:$0xff]   ;;  %v1908_v18 = vld [vmem:[#allocation10 + $0x60] sm:$0xff]   ;;  %p2070_p4 = scmp.ne.s32.totalorder %s1667_s20, %s2069_s21  ;;  %p2075_p6 = scmp.lt.s32.totalorder %s2069_s21, %s2069_s21 }
  0x51   :  { %1792 = vmatprep.subr.bf16.mxu1 %v1898_v8  ;;  %v1902_v12 = vld [vmem:[#allocation10 + $0xd0] sm:$0xff]   ;;  %v1905_v15 = vld [vmem:[#allocation10 + $0x18] sm:$0xff]   ;;  %v1909_v19 = vld [vmem:[#allocation10 + $0x20] sm:$0xff]   ;;  %v2197_v42 = vsub.s32 %v167_v34, %v169_v35 }
  0x52   :  { %1771 = vmatpush3.bf16.msra.mxu0 %v1897_v7  ;;  %v1903_v13 = vld [vmem:[#allocation10 + $0x90] sm:$0xff]   ;;  %v1906_v16 = vld [vmem:[#allocation10 + $0xd8] sm:$0xff]   ;;  %v1910_v20 = vld [vmem:[#allocation10 + $0xe0] sm:$0xff]   ;;  %p2076_p7 = por %p2075_p6, %p2074_p5 }
  0x53   :  { %1772 = vmatprep.subr.bf16.mxu0 %v1900_v10  ;;  %v1907_v17 = vld [vmem:[#allocation10 + $0x98] sm:$0xff]   ;;  %v1911_v21 = vld [vmem:[#allocation10 + $0xa0] sm:$0xff]   ;;  %v1912_v22 = vld [vmem:[#allocation10 + $0x68] sm:$0xff]  }
  0x54   :  { %1793 = vmatpush3.bf16.msra.mxu1 %v1899_v9  ;;  %v1913_v23 = vld [vmem:[#allocation10 + $0x28] sm:$0xff]   ;;  %v1916_v26 = vld [vmem:[#allocation10 + $0x70] sm:$0xff]   ;;  %v1920_v33 = vld [vmem:[#allocation10 + $0x78] sm:$0xff]   ;;  %p2077_p8 = pnand %p2076_p7, %p2070_p4 }
  0x55   :  { %1794 = vmatprep.subr.bf16.mxu1 %v1902_v12  ;;  %v1914_v24 = vld [vmem:[#allocation10 + $0xe8] sm:$0xff]   ;;  %v1917_v30 = vld [vmem:[#allocation10 + $0x30] sm:$0xff]   ;;  %v1921_v36 = vld [vmem:[#allocation10 + $0x38] sm:$0xff]  }
  0x56   :  { %1773 = vmatpush3.bf16.msra.mxu0 %v1901_v11  ;;  %v1915_v25 = vld [vmem:[#allocation10 + $0xa8] sm:$0xff]   ;;  %v1918_v31 = vld [vmem:[#allocation10 + $0xf0] sm:$0xff]   ;;  %v1922_v37 = vld [vmem:[#allocation10 + $0xf8] sm:$0xff]  }
  0x57   :  { %1774 = vmatprep.subr.bf16.mxu0 %v1904_v14  ;;  %v1919_v32 = vld [vmem:[#allocation10 + $0xb0] sm:$0xff]   ;;  %v1923_v38 = vld [vmem:[#allocation10 + $0xb8] sm:$0xff]   ;;  %v92_v40 = vld [vmem:[#allocation4 + $0x8] sm:$0xff] }
  0x58   :  { %1795 = vmatpush3.bf16.msra.mxu1 %v1903_v13  ;;  %v91_v39 = vld [vmem:[#allocation4] sm:$0xff]  ;;  %v93_v41 = vld [vmem:[#allocation4 + $0x10] sm:$0xff]  ;;  %v94_v43 = vld [vmem:[#allocation4 + $0x18] sm:$0xff]  ;;  %v98_v46 = vunpack.c.l.bf16 %v92_v40  ;;  %v99_v47 = vunpack.c.h.bf16 %v92_v40 }
  0x59   :  { %1796 = vmatprep.subr.bf16.mxu1 %v1906_v16  ;;  %v96_v44 = vunpack.c.l.bf16 %v91_v39  ;;  %v97_v45 = vunpack.c.h.bf16 %v91_v39  ;;  %v100_v48 = vunpack.c.l.bf16 %v93_v41  ;;  %v101_v49 = vunpack.c.h.bf16 %v93_v41  ;;  %v2203_v27 = vld [vmem:[#allocation7 + $0x8] sm:$0xff] }
  0x5a   :  { %1775 = vmatpush3.bf16.msra.mxu0 %v1905_v15  ;;  %v102_v50 = vunpack.c.l.bf16 %v94_v43  ;;  %v103_v51 = vunpack.c.h.bf16 %v94_v43  ;;  %v116_v54 = vrot.slane %v98_v46, 4  ;;  %v123_v55 = vsel %vm122_vm7, %v99_v47, 0.0 }
  0x5b   :  { %1776 = vmatprep.subr.bf16.mxu0 %v1908_v18  ;;  %v104_v52 = vrot.slane %v96_v44, 4  ;;  %v110_v53 = vrot.slane %v97_v45, 4  ;;  %v124_v56 = vrot.slane %v123_v55, 4  ;;  %v130_v57 = vrot.slane %v100_v48, 4 }
  0x5c   :  { %1797 = vmatpush3.bf16.msra.mxu1 %v1907_v17  ;;  %v136_v58 = vrot.slane %v101_v49, 4  ;;  %v142_v59 = vrot.slane %v102_v50, 4  ;;  %v117_v62 = vadd.f32 %v116_v54, %v98_v46  ;;  %v148_v63 = vsel %vm122_vm7, %v103_v51, 0.0  ;;  %v2219_v54 = vld [vmem:[#allocation7 + $0x80] sm:$0xff] }
  0x5d   :  { %1798 = vmatprep.subr.bf16.mxu1 %v1910_v20  ;;  %v105_v60 = vadd.f32 %v104_v52, %v96_v44  ;;  %v111_v61 = vadd.f32 %v110_v53, %v97_v45  ;;  %v125_v1 = vadd.f32 %v124_v56, %v123_v55  ;;  %v131_v2 = vadd.f32 %v130_v57, %v100_v48  ;;  %v2209_v44 = vld [vmem:[#allocation7 + $0x40] sm:$0xff]  ;;  %v2211_v45 = vld [vmem:[#allocation7 + $0x48] sm:$0xff] }
  0x5e   :  { %1777 = vmatpush3.bf16.msra.mxu0 %v1909_v19  ;;  %v137_v3 = vadd.f32 %v136_v58, %v101_v49  ;;  %v143_v4 = vadd.f32 %v142_v59, %v102_v50  ;;  %v118_v7 = vrot.slane %v117_v62, 2  ;;  %v149_v8 = vrot.slane %v148_v63, 4  ;;  %v2213_v48 = vld [vmem:[#allocation7 + $0x60] sm:$0xff]  ;;  %v2217_v53 = vld [vmem:[#allocation7 + $0x68] sm:$0xff] }
  0x5f   :  { %1778 = vmatprep.subr.bf16.mxu0 %v1912_v22  ;;  %v106_v5 = vrot.slane %v105_v60, 2  ;;  %v112_v6 = vrot.slane %v111_v61, 2  ;;  %v126_v9 = vrot.slane %v125_v1, 2  ;;  %v132_v10 = vrot.slane %v131_v2, 2  ;;  %v1924_v22 = vld [vmem:[#allocation10 + $0x140] sm:$0xff]  }
  0x60   :  { %1799 = vmatpush3.bf16.msra.mxu1 %v1911_v21  ;;  %v138_v11 = vrot.slane %v137_v3, 2  ;;  %v144_v12 = vrot.slane %v143_v4, 2  ;;  %v119_v15 = vadd.f32 %v118_v7, %v117_v62  ;;  %v150_v16 = vadd.f32 %v149_v8, %v148_v63  ;;  %v2201_v21 = vld [vmem:[#allocation7] sm:$0xff]  ;;  %v2224_v59 = vld [vmem:[#allocation7 + $0x88] sm:$0xff] }
  0x61   :  { %1800 = vmatprep.subr.bf16.mxu1 %v1914_v24  ;;  %v107_v13 = vadd.f32 %v106_v5, %v105_v60  ;;  %v113_v14 = vadd.f32 %v112_v6, %v111_v61  ;;  %v127_v17 = vadd.f32 %v126_v9, %v125_v1  ;;  %v133_v18 = vadd.f32 %v132_v10, %v131_v2  ;;  %v2226_v60 = vld [vmem:[#allocation7 + $0xa0] sm:$0xff]  ;;  %v2232_v2 = vld [vmem:[#allocation7 + $0xa8] sm:$0xff] }
  0x62   :  { %1779 = vmatpush3.bf16.msra.mxu0 %v1913_v23  ;;  %v139_v19 = vadd.f32 %v138_v11, %v137_v3  ;;  %v145_v20 = vadd.f32 %v144_v12, %v143_v4  ;;  %v262_v49 = vunpack.c.l.bf16 %v2201_v21  ;;  %v263_v50 = vunpack.c.h.bf16 %v2201_v21  ;;  %v244_v6 = vld [vmem:[#allocation7 + $0xc0] sm:$0xff]  ;;  %v2236_v7 = vld [vmem:[#allocation7 + $0xc8] sm:$0xff] }
  0x63   :  { %1780 = vmatprep.subr.bf16.mxu0 %v1916_v26  ;;  %v108_v23 = vrot.slane %v107_v13, 1  ;;  %v114_v24 = vrot.slane %v113_v14, 1  ;;  %v151_v26 = vrot.slane %v150_v16, 2  ;;  %v128_v28 = vrot.slane %v127_v17, 1  ;;  %v248_v12 = vld [vmem:[#allocation7 + $0xe0] sm:$0xff] }
  0x64   :  { %1801 = vmatpush3.bf16.msra.mxu1 %v1915_v25  ;;  %v120_v25 = vrot.slane %v119_v15, 1  ;;  %v134_v29 = vrot.slane %v133_v18, 1  ;;  %v264_v55 = vunpack.c.l.bf16 %v2203_v27  ;;  %v265_v56 = vunpack.c.h.bf16 %v2203_v27 }
  0x65   :  { %1802 = vmatprep.subr.bf16.mxu1 %v1918_v31  ;;  %v146_v31 = vrot.slane %v145_v20, 1  ;;  %v109_v34 = vadd.f32 %v108_v23, %v107_v13  ;;  %v115_v35 = vadd.f32 %v114_v24, %v113_v14  ;;  %v129_v39 = vadd.f32 %v128_v28, %v127_v17  ;;  %v2245_v17 = vld [vmem:[#allocation7 + $0xe8] sm:$0xff] }
  0x66   :  { %1781 = vmatpush3.bf16.msra.mxu0 %v1917_v30  ;;  %v140_v30 = vrot.slane %v139_v19, 1  ;;  %v135_v40 = vadd.f32 %v134_v29, %v133_v18  ;;  %v278_v8 = vunpack.c.l.bf16 %v2209_v44  ;;  %v279_v9 = vunpack.c.h.bf16 %v2209_v44  ;;  %v2254_v29 = vld [vmem:[#allocation7 + $0x108] sm:$0xff] }
  0x67   :  { %1782 = vmatprep.subr.bf16.mxu0 %v1920_v33  ;;  %v1926_v33 = vld [vmem:[#allocation10 + $0x1c0] sm:$0xff]   ;;  %v147_v43 = vadd.f32 %v146_v31, %v145_v20  ;;  %v163_v47 = vcombine.low %v109_v34, %v115_v35  ;;  %v280_v10 = vunpack.c.l.bf16 %v2211_v45  ;;  %v281_v13 = vunpack.c.h.bf16 %v2211_v45 }
  0x68   :  { %1803 = vmatpush3.bf16.msra.mxu1 %v1919_v32  ;;  %v2205_v32 = vld [vmem:[#allocation7 + $0x20] sm:$0xff]  ;;  %v141_v41 = vadd.f32 %v140_v30, %v139_v19  ;;  %v286_v14 = vunpack.c.l.bf16 %v2213_v48  ;;  %v288_v18 = vunpack.c.l.bf16 %v2217_v53  ;;  %v289_v19 = vunpack.c.h.bf16 %v2217_v53 }
  0x69   :  { %1804 = vmatprep.subr.bf16.mxu1 %v1922_v37  ;;  %v152_v37 = vadd.f32 %v151_v26, %v150_v16  ;;  %v171_v58 = vrot.slane %v163_v47, %v2197_v42  ;;  %v270_v61 = vunpack.c.l.bf16 %v2205_v32  ;;  %v271_v62 = vunpack.c.h.bf16 %v2205_v32 }
  0x6a   :  { %1783 = vmatpush3.bf16.msra.mxu0 %v1921_v36  ;;  %v121_v36 = vadd.f32 %v120_v25, %v119_v15  ;;  %v180_v52 = vcombine.low %v135_v40, %v141_v41  ;;  %v287_v15 = vunpack.c.h.bf16 %v2213_v48  ;;  %v294_v20 = vunpack.c.l.bf16 %v2219_v54 }
  0x6b   :  { %1812 = vmatprep.subr.bf16.mxu0 %v1924_v22  ;;  %v153_v46 = vrot.slane %v152_v37, 1  ;;  %v252_v22 = vld [vmem:[#allocation7 + $0x100] sm:$0xff]  ;;  %v295_v23 = vunpack.c.h.bf16 %v2219_v54  ;;  %v296_v24 = vunpack.c.l.bf16 %v2224_v59  ;;  %v297_v25 = vunpack.c.h.bf16 %v2224_v59  ;;  %v95_v54 = vld [vmem:[#allocation2] sm:$0xff] }
  0x6c   :  { %1805 = vmatpush3.bf16.msra.mxu1 %v1923_v38  ;;  %v2207_v38 = vld [vmem:[#allocation7 + $0x28] sm:$0xff]  ;;  %v164_v51 = vcombine.low %v121_v36, %v129_v39  ;;  %v188_v1 = vrot.slane %v180_v52, %v2197_v42  ;;  %v302_v26 = vunpack.c.l.bf16 %v2226_v60  ;;  %v303_v30 = vunpack.c.h.bf16 %v2226_v60 }
  0x6d   :  { %1834 = vmatprep.subr.bf16.mxu1 %v1926_v33  ;;  %v154_v57 = vadd.f32 %v153_v46, %v152_v37  ;;  %v272_v3 = vunpack.c.l.bf16 %v2207_v38  ;;  %v273_v4 = vunpack.c.h.bf16 %v2207_v38  ;;  %v304_v31 = vunpack.c.l.bf16 %v2232_v2  ;;  %v256_v33 = vld [vmem:[#allocation7 + $0x120] sm:$0xff]  ;;  %v257_v39 = vld [vmem:[#allocation7 + $0x128] sm:$0xff] }
  0x6e   :  { %v178_v63 = vrot.slane %v164_v51, %v2197_v42  ;;  %v305_v32 = vunpack.c.h.bf16 %v2232_v2  ;;  %v310_v34 = vunpack.c.l.bf16 %v244_v6  ;;  %v311_v35 = vunpack.c.h.bf16 %v244_v6 }
  0x6f   :  { %v181_v5 = vcombine.low %v147_v43, %v154_v57  ;;  %v312_v36 = vunpack.c.l.bf16 %v2236_v7  ;;  %v313_v37 = vunpack.c.h.bf16 %v2236_v7  ;;  %v318_v40 = vunpack.c.l.bf16 %v248_v12 }
  0x70   :  { %v179_v11 = vcombine.low %v171_v58, %v178_v63  ;;  %v319_v41 = vunpack.c.h.bf16 %v248_v12  ;;  %v320_v43 = vunpack.c.l.bf16 %v2245_v17  ;;  %v321_v44 = vunpack.c.h.bf16 %v2245_v17 }
  0x71   :  { %v195_v16 = vrot.slane %v181_v5, %v2197_v42  ;;  %v326_v45 = vunpack.c.l.bf16 %v252_v22  ;;  %v327_v46 = vunpack.c.h.bf16 %v252_v22  ;;  %v328_v47 = vunpack.c.l.bf16 %v2254_v29 }
  0x72   :  { %v329_v51 = vunpack.c.h.bf16 %v2254_v29  ;;  %v334_v52 = vunpack.c.l.bf16 %v256_v33  ;;  %v335_v53 = vunpack.c.h.bf16 %v256_v33  ;;  %v336_v58 = vunpack.c.l.bf16 %v257_v39 }
  0x73   :  { %v196_v28 = vcombine.low %v188_v1, %v195_v16  ;;  %v337_v59 = vunpack.c.h.bf16 %v257_v39  ;;  %v342_v60 = vadd.f32 %v270_v61, %v262_v49  ;;  %v352_v1 = vadd.f32 %v271_v62, %v263_v50 }
  0x74   :  { %v362_v2 = vadd.f32 %v272_v3, %v264_v55  ;;  %v372_v5 = vadd.f32 %v273_v4, %v265_v56  ;;  %v432_v12 = vadd.f32 %v311_v35, %v303_v30  ;;  %v442_v21 = vadd.f32 %v312_v36, %v304_v31 }
  0x75   :  { %v201_v38 = vrot.slane %v196_v28, 7  ;;  %v343_v7 = vadd.f32 %v342_v60, %v278_v8  ;;  %v353_v17 = vadd.f32 %v352_v1, %v279_v9  ;;  %v452_v56 = vadd.f32 %v313_v37, %v305_v32 }
  0x76   :  { %v363_v22 = vadd.f32 %v362_v2, %v280_v10  ;;  %v373_v49 = vadd.f32 %v372_v5, %v281_v13  ;;  %v433_v29 = vadd.f32 %v432_v12, %v319_v41  ;;  %v443_v8 = vadd.f32 %v442_v21, %v320_v43 }
  0x77   :  { %v203_v48 = vsel %vm202_vm8, %v201_v38, %v179_v11  ;;  %v422_v11 = vadd.f32 %v310_v34, %v302_v26  ;;  %v344_v61 = vadd.f32 %v343_v7, %v286_v14  ;;  %v354_v50 = vadd.f32 %v353_v17, %v287_v15 }
  0x78   :  { %v205_v57 = vsel %vm204_vm9, %v201_v38, %v203_v48  ;;  %v364_v55 = vadd.f32 %v363_v22, %v288_v18  ;;  %v374_v27 = vadd.f32 %v373_v49, %v289_v19  ;;  %v434_v4 = vadd.f32 %v433_v29, %v327_v46 }
  0x79   :  { %v207_v63 = vsel %vm206_vm10, %v201_v38, %v205_v57  ;;  %v423_v28 = vadd.f32 %v422_v11, %v318_v40  ;;  %v345_v62 = vadd.f32 %v344_v61, %v294_v20  ;;  %v355_v26 = vadd.f32 %v354_v50, %v295_v23  ;;  %v2279_v50 = vld [vmem:[#allocation7 + $0x10] sm:$0xff] }
  0x7a   :  { %v209_v6 = vsel %vm208_vm11, %v201_v38, %v207_v63  ;;  %v365_v30 = vadd.f32 %v364_v55, %v296_v24  ;;  %v375_v9 = vadd.f32 %v374_v27, %v297_v25  ;;  %v453_v10 = vadd.f32 %v452_v56, %v321_v44  ;;  %v2281_v55 = vld [vmem:[#allocation7 + $0x18] sm:$0xff] }
  0x7b   :  { %v211_v16 = vadd.f32 %v209_v6, %v95_v54  ;;  %v424_v3 = vadd.f32 %v423_v28, %v326_v45  ;;  %v346_v13 = vrot.slane %v345_v62, 4  ;;  %v435_v33 = vadd.f32 %v434_v4, %v335_v53  ;;  %v2285_v4 = vld [vmem:[#allocation7 + $0x38] sm:$0xff] }
  0x7c   :  { %v444_v34 = vadd.f32 %v443_v8, %v328_v47  ;;  %v356_v31 = vrot.slane %v355_v26, 4  ;;  %v366_v35 = vrot.slane %v365_v30, 4  ;;  %v376_v0 = vrot.slane %v375_v9, 4  ;;  %v2287_v8 = vld [vmem:[#allocation7 + $0x50] sm:$0xff] }
  0x7d   :  { %219 = vst.msk [vmem:[#allocation2] sm:$0xff] %vm2191_vm6, %v211_v16  ;;  %v425_v14 = vadd.f32 %v424_v3, %v334_v52  ;;  %v454_v36 = vadd.f32 %v453_v10, %v329_v51  ;;  %v347_v15 = vadd.f32 %v346_v13, %v345_v62  ;;  %v436_v19 = vrot.slane %v435_v33, 4  ;;  %v2283_v3 = vld [vmem:[#allocation7 + $0x30] sm:$0xff] }
  0x7e   :  { %v445_v32 = vadd.f32 %v444_v34, %v336_v58  ;;  %v357_v20 = vadd.f32 %v356_v31, %v355_v26  ;;  %v367_v37 = vadd.f32 %v366_v35, %v365_v30  ;;  %v377_v38 = vadd.f32 %v376_v0, %v375_v9  ;;  %v2289_v9 = vld [vmem:[#allocation7 + $0x58] sm:$0xff]  ;;  %v2297_v31 = vld [vmem:[#allocation7 + $0x90] sm:$0xff] }
  0x7f   :  { %v426_v18 = vrot.slane %v425_v14, 4  ;;  %v455_v39 = vadd.f32 %v454_v36, %v337_v59  ;;  %v348_v23 = vrot.slane %v347_v15, 2  ;;  %v437_v25 = vadd.f32 %v436_v19, %v435_v33  ;;  %v2293_v33 = vld [vmem:[#allocation7 + $0x70] sm:$0xff]  ;;  %v2295_v34 = vld [vmem:[#allocation7 + $0x78] sm:$0xff] }
  0x80   :  { %v446_v40 = vrot.slane %v445_v32, 4  ;;  %v358_v41 = vrot.slane %v357_v20, 2  ;;  %v368_v43 = vrot.slane %v367_v37, 2  ;;  %v378_v44 = vrot.slane %v377_v38, 2  ;;  %v2299_v35 = vld [vmem:[#allocation7 + $0x98] sm:$0xff] }
  0x81   :  { %v427_v24 = vadd.f32 %v426_v18, %v425_v14  ;;  %v456_v45 = vrot.slane %v455_v39, 4  ;;  %v349_v46 = vadd.f32 %v348_v23, %v347_v15  ;;  %v438_v48 = vrot.slane %v437_v25, 2 }
  0x82   :  { %v447_v51 = vadd.f32 %v446_v40, %v445_v32  ;;  %v359_v52 = vadd.f32 %v358_v41, %v357_v20  ;;  %v369_v53 = vadd.f32 %v368_v43, %v367_v37  ;;  %v379_v54 = vadd.f32 %v378_v44, %v377_v38  ;;  %v242_v20 = vld [vmem:[#allocation7 + $0xb0] sm:$0xff]  ;;  %v2306_v37 = vld [vmem:[#allocation7 + $0xb8] sm:$0xff] }
  0x83   :  { %v428_v47 = vrot.slane %v427_v24, 2  ;;  %v457_v57 = vadd.f32 %v456_v45, %v455_v39  ;;  %v350_v58 = vrot.slane %v349_v46, 1  ;;  %v439_v63 = vadd.f32 %v438_v48, %v437_v25  ;;  %v2314_v44 = vld [vmem:[#allocation7 + $0xd8] sm:$0xff]  ;;  %v250_v48 = vld [vmem:[#allocation7 + $0xf0] sm:$0xff] }
  0x84   :  { %v448_v59 = vrot.slane %v447_v51, 2  ;;  %v360_v1 = vrot.slane %v359_v52, 1  ;;  %v370_v2 = vrot.slane %v369_v53, 1  ;;  %v380_v5 = vrot.slane %v379_v54, 1 }
  0x85   :  { %v429_v60 = vadd.f32 %v428_v47, %v427_v24  ;;  %v458_v6 = vrot.slane %v457_v57, 2  ;;  %v351_v7 = vadd.f32 %v350_v58, %v349_v46  ;;  %v440_v12 = vrot.slane %v439_v63, 1  ;;  %v246_v24 = vld [vmem:[#allocation7 + $0xd0] sm:$0xff]  ;;  %v2323_v58 = vld [vmem:[#allocation7 + $0xf8] sm:$0xff] }
  0x86   :  { %v449_v16 = vadd.f32 %v448_v59, %v447_v51  ;;  %v361_v17 = vadd.f32 %v360_v1, %v359_v52  ;;  %v371_v22 = vadd.f32 %v370_v2, %v369_v53  ;;  %v381_v49 = vadd.f32 %v380_v5, %v379_v54  ;;  %v254_v1 = vld [vmem:[#allocation7 + $0x110] sm:$0xff] }
  0x87   :  { %v430_v11 = vrot.slane %v429_v60, 1  ;;  %v459_v61 = vadd.f32 %v458_v6, %v457_v57  ;;  %v441_v29 = vadd.f32 %v440_v12, %v439_v63  ;;  %v266_v0 = vunpack.c.l.bf16 %v2279_v50  ;;  %v258_v12 = vld [vmem:[#allocation7 + $0x130] sm:$0xff] }
  0x88   :  { %v450_v21 = vrot.slane %v449_v16, 1  ;;  %v518_v56 = vcombine.low %v351_v7, %v361_v17  ;;  %v519_v62 = vcombine.low %v371_v22, %v381_v49  ;;  %v267_v36 = vunpack.c.h.bf16 %v2279_v50 }
  0x89   :  { %v431_v28 = vadd.f32 %v430_v11, %v429_v60  ;;  %v460_v27 = vrot.slane %v459_v61, 1  ;;  %v268_v15 = vunpack.c.l.bf16 %v2281_v55  ;;  %v269_v18 = vunpack.c.h.bf16 %v2281_v55 }
  0x8a   :  { %v451_v26 = vadd.f32 %v450_v21, %v449_v16  ;;  %v526_v13 = vrot.slane %v518_v56, %v2197_v42  ;;  %v533_v14 = vrot.slane %v519_v62, %v2197_v42  ;;  %v274_v38 = vunpack.c.l.bf16 %v2283_v3 }
  0x8b   :  { %v552_v30 = vcombine.low %v431_v28, %v441_v29  ;;  %v461_v10 = vadd.f32 %v460_v27, %v459_v61  ;;  %v275_v39 = vunpack.c.h.bf16 %v2283_v3  ;;  %v276_v25 = vunpack.c.l.bf16 %v2285_v4 }
  0x8c   :  { %v534_v23 = vcombine.low %v526_v13, %v533_v14  ;;  %v277_v40 = vunpack.c.h.bf16 %v2285_v4  ;;  %v282_v41 = vunpack.c.l.bf16 %v2287_v8  ;;  %v283_v45 = vunpack.c.h.bf16 %v2287_v8 }
  0x8d   :  { %v553_v19 = vcombine.low %v451_v26, %v461_v10  ;;  %v560_v32 = vrot.slane %v552_v30, %v2197_v42  ;;  %v284_v46 = vunpack.c.l.bf16 %v2289_v9  ;;  %v285_v47 = vunpack.c.h.bf16 %v2289_v9 }
  0x8e   :  { %v290_v51 = vunpack.c.l.bf16 %v2293_v33  ;;  %v291_v52 = vunpack.c.h.bf16 %v2293_v33  ;;  %v292_v53 = vunpack.c.l.bf16 %v2295_v34  ;;  %v293_v54 = vunpack.c.h.bf16 %v2295_v34 }
  0x8f   :  { %v567_v43 = vrot.slane %v553_v19, %v2197_v42  ;;  %v298_v60 = vunpack.c.l.bf16 %v2297_v31  ;;  %v299_v63 = vunpack.c.h.bf16 %v2297_v31  ;;  %v300_v59 = vunpack.c.l.bf16 %v2299_v35  ;;  %v2338_v31 = vld [vmem:[#allocation7 + $0x118] sm:$0xff] }
  0x90   :  { %v301_v2 = vunpack.c.h.bf16 %v2299_v35  ;;  %v306_v5 = vunpack.c.l.bf16 %v242_v20  ;;  %v307_v6 = vunpack.c.h.bf16 %v242_v20  ;;  %v308_v7 = vunpack.c.l.bf16 %v2306_v37 }
  0x91   :  { %v568_v57 = vcombine.low %v560_v32, %v567_v43  ;;  %v309_v16 = vunpack.c.h.bf16 %v2306_v37  ;;  %v314_v17 = vunpack.c.l.bf16 %v246_v24  ;;  %v315_v22 = vunpack.c.h.bf16 %v246_v24 }
  0x92   :  { %v316_v49 = vunpack.c.l.bf16 %v2314_v44  ;;  %v317_v61 = vunpack.c.h.bf16 %v2314_v44  ;;  %v322_v28 = vunpack.c.l.bf16 %v250_v48  ;;  %v323_v29 = vunpack.c.h.bf16 %v250_v48 }
  0x93   :  { %v588_v11 = vrot.slane %v568_v57, 7  ;;  %v324_v50 = vunpack.c.l.bf16 %v2323_v58  ;;  %v330_v55 = vunpack.c.l.bf16 %v254_v1  ;;  %v331_v27 = vunpack.c.h.bf16 %v254_v1 }
  0x94   :  { %v338_v62 = vunpack.c.l.bf16 %v258_v12  ;;  %v339_v3 = vunpack.c.h.bf16 %v258_v12  ;;  %v382_v4 = vadd.f32 %v274_v38, %v266_v0  ;;  %v392_v26 = vadd.f32 %v275_v39, %v267_v36 }
  0x95   :  { %v589_v21 = vsel %vm202_vm8, %v588_v11, %v534_v23  ;;  %v402_v30 = vadd.f32 %v276_v25, %v268_v15  ;;  %v412_v9 = vadd.f32 %v277_v40, %v269_v18  ;;  %v462_v14 = vadd.f32 %v314_v17, %v306_v5 }
  0x96   :  { %v590_v56 = vsel %vm204_vm9, %v588_v11, %v589_v21  ;;  %v383_v13 = vadd.f32 %v382_v4, %v282_v41  ;;  %v472_v33 = vadd.f32 %v315_v22, %v307_v6  ;;  %v393_v35 = vadd.f32 %v392_v26, %v283_v45  ;;  %v1925_v22 = vld [vmem:[#allocation10 + $0x100] sm:$0xff]   ;;  %v1930_v4 = vld [vmem:[#allocation10 + $0x1c8] sm:$0xff]  }
  0x97   :  { %v591_v8 = vsel %vm206_vm10, %v588_v11, %v590_v56  ;;  %v403_v19 = vadd.f32 %v402_v30, %v284_v46  ;;  %v413_v32 = vadd.f32 %v412_v9, %v285_v47  ;;  %v463_v23 = vadd.f32 %v462_v14, %v322_v28  ;;  %v2342_v46 = vld [vmem:[#allocation7 + $0x138] sm:$0xff] }
  0x98   :  { %v592_v10 = vsel %vm208_vm11, %v588_v11, %v591_v8  ;;  %v384_v20 = vadd.f32 %v383_v13, %v290_v51  ;;  %v473_v24 = vadd.f32 %v472_v33, %v323_v29  ;;  %v482_v0 = vadd.f32 %v316_v49, %v308_v7  ;;  %v1928_v29 = vld [vmem:[#allocation10 + $0x148] sm:$0xff]   ;;  %v1932_v13 = vld [vmem:[#allocation10 + $0x150] sm:$0xff]  }
  0x99   :  { %v640_v34 = vmul.f32 0.025, %v592_v10  ;;  %v394_v43 = vadd.f32 %v393_v35, %v291_v52  ;;  %v404_v36 = vadd.f32 %v403_v19, %v292_v53  ;;  %v414_v15 = vadd.f32 %v413_v32, %v293_v54  ;;  %v1929_v8 = vld [vmem:[#allocation10 + $0x108] sm:$0xff]  }
  0x9a   :  { %v332_v18 = vunpack.c.l.bf16 %v2338_v31  ;;  %v385_v39 = vadd.f32 %v384_v20, %v298_v60  ;;  %v464_v25 = vadd.f32 %v463_v23, %v330_v55  ;;  %v474_v40 = vadd.f32 %v473_v24, %v331_v27  ;;  %v1927_v27 = vld [vmem:[#allocation10 + $0x180] sm:$0xff]   ;;  %v1931_v19 = vld [vmem:[#allocation10 + $0x188] sm:$0xff]   ;;  %v1933_v24 = vld [vmem:[#allocation10 + $0x110] sm:$0xff]  }
  0x9b   :  { %v642_v38 = vmax.f32 %v640_v34, 0.0  ;;  %v395_v57 = vadd.f32 %v394_v43, %v299_v63  ;;  %v405_v45 = vadd.f32 %v404_v36, %v300_v59  ;;  %v415_v51 = vadd.f32 %v414_v15, %v301_v2  ;;  %v1936_v36 = vld [vmem:[#allocation10 + $0x158] sm:$0xff]  }
  0x9c   :  { %v386_v47 = vrot.slane %v385_v39, 4  ;;  %v465_v1 = vadd.f32 %v464_v25, %v338_v62  ;;  %v483_v5 = vadd.f32 %v482_v0, %v324_v50  ;;  %v475_v54 = vadd.f32 %v474_v40, %v339_v3  ;;  %v1935_v40 = vld [vmem:[#allocation10 + $0x190] sm:$0xff]  }
  0x9d   :  { %v653_v41 = vrot.slane %v642_v38, %v2197_v42  ;;  %v646_v48 = vcombine.high %v642_v38, %v642_v38  ;;  %v396_v53 = vrot.slane %v395_v57, 4  ;;  %v406_v60 = vrot.slane %v405_v45, 4 }
  0x9e   :  { %v416_v11 = vrot.slane %v415_v51, 4  ;;  %v466_v12 = vrot.slane %v465_v1, 4  ;;  %v340_v63 = vunpack.c.l.bf16 %v2342_v46  ;;  %v387_v59 = vadd.f32 %v386_v47, %v385_v39 }
  0x9f   :  { %v661_v6 = vcombine.high %v653_v41, %v653_v41  ;;  %v660_v52 = vrot.slane %v646_v48, %v2197_v42  ;;  %v688_v7 = vpack.c.bf16 %v653_v41, %v653_v41  ;;  %v397_v2 = vadd.f32 %v396_v53, %v395_v57  ;;  %v1937_v48 = vld [vmem:[#allocation10 + $0x118] sm:$0xff]  }
  0xa0   :  { %v407_v21 = vadd.f32 %v406_v60, %v405_v45  ;;  %v417_v50 = vadd.f32 %v416_v11, %v415_v51  ;;  %v467_v56 = vadd.f32 %v466_v12, %v465_v1  ;;  %v476_v62 = vrot.slane %v475_v54, 4  ;;  %v1940_v45 = vld [vmem:[#allocation10 + $0x160] sm:$0xff]   ;;  %v1944_v12 = vld [vmem:[#allocation10 + $0x168] sm:$0xff]  }
  0xa1   :  { %v689_v17 = vpack.c.bf16 %v661_v6, %v661_v6  ;;  %v662_v49 = vcombine.high %v660_v52, %v660_v52  ;;  %v690_v28 = vpack.c.bf16 %v660_v52, %v660_v52  ;;  %v484_v3 = vadd.f32 %v483_v5, %v332_v18  ;;  %v1939_v5 = vld [vmem:[#allocation10 + $0x198] sm:$0xff]   ;;  %v1941_v60 = vld [vmem:[#allocation10 + $0x120] sm:$0xff]  }
  0xa2   :  { %v325_v26 = vunpack.c.h.bf16 %v2323_v58  ;;  %v333_v30 = vunpack.c.h.bf16 %v2338_v31  ;;  %v477_v9 = vadd.f32 %v476_v62, %v475_v54  ;;  %v388_v14 = vrot.slane %v387_v59, 2  ;;  %v1934_v31 = vld [vmem:[#allocation10 + $0x1d0] sm:$0xff]  }
  0xa3   :  { %1290 = vmatprep.mubr.bf16.mxu0 %v689_v17  ;;  %v691_v55 = vpack.c.bf16 %v662_v49, %v662_v49  ;;  %v485_v10 = vadd.f32 %v484_v3, %v340_v63  ;;  %v398_v33 = vrot.slane %v397_v2, 2  ;;  %v408_v34 = vrot.slane %v407_v21, 2  ;;  %v1947_v3 = vld [vmem:[#allocation10 + $0x1a8] sm:$0xff]  }
  0xa4   :  { %1291 = vmatmul.mubr.bf16.vlgmr.msra.gmra.mrb[0].mxu0 %v688_v7  ;;  %v418_v35 = vrot.slane %v417_v50, 2  ;;  %v468_v32 = vrot.slane %v467_v56, 2  ;;  %v478_v20 = vrot.slane %v477_v9, 2  ;;  %v492_v58 = vadd.f32 %v317_v61, %v309_v16  ;;  %v1938_v61 = vld [vmem:[#allocation10 + $0x1d8] sm:$0xff]   ;;  %v1942_v7 = vld [vmem:[#allocation10 + $0x1e0] sm:$0xff]  }
  0xa5   :  { %1813 = vmatpush3.bf16.msra.mxu0 %v1925_v22  ;;  %1330 = vmatprep.mubr.bf16.mxu1 %v691_v55  ;;  %v486_v23 = vrot.slane %v485_v10, 4  ;;  %v341_v0 = vunpack.c.h.bf16 %v2342_v46  ;;  %v389_v15 = vadd.f32 %v388_v14, %v387_v59  ;;  %v399_v18 = vadd.f32 %v398_v33, %v397_v2  ;;  %v1943_v59 = vld [vmem:[#allocation10 + $0x1a0] sm:$0xff]   ;;  %v1945_v55 = vld [vmem:[#allocation10 + $0x128] sm:$0xff]   ;;  %v1952_v14 = vld [vmem:[#allocation10 + $0x178] sm:$0xff]  }
  0xa6   :  { %1331 = vmatmul.mubr.bf16.vlgmr.msra.gmra.mrb[0].mxu1 %v690_v28  ;;  %1814 = vmatprep.subr.bf16.mxu0 %v1928_v29  ;;  %v493_v43 = vadd.f32 %v492_v58, %v325_v26  ;;  %v409_v39 = vadd.f32 %v408_v34, %v407_v21  ;;  %v419_v25 = vadd.f32 %v418_v35, %v417_v50  ;;  %v1946_v50 = vld [vmem:[#allocation10 + $0x1e8] sm:$0xff]   ;;  %v1951_v33 = vld [vmem:[#allocation10 + $0x1b0] sm:$0xff]  }
  0xa7   :  { %1835 = vmatpush3.bf16.msra.mxu1 %v1927_v27  ;;  %v487_v38 = vadd.f32 %v486_v23, %v485_v10  ;;  %v469_v37 = vadd.f32 %v468_v32, %v467_v56  ;;  %v479_v41 = vadd.f32 %v478_v20, %v477_v9  ;;  %v390_v46 = vrot.slane %v389_v15, 1  ;;  %v1948_v56 = vld [vmem:[#allocation10 + $0x170] sm:$0xff]   ;;  %v1954_v20 = vld [vmem:[#allocation10 + $0x1f8] sm:$0xff]  }
  0xa8   :  { %1836 = vmatprep.subr.bf16.mxu1 %v1930_v4  ;;  %v494_v16 = vadd.f32 %v493_v43, %v333_v30  ;;  %v400_v47 = vrot.slane %v399_v18, 1  ;;  %v410_v51 = vrot.slane %v409_v39, 1  ;;  %v420_v1 = vrot.slane %v419_v25, 1  ;;  %v1950_v9 = vld [vmem:[#allocation10 + $0x1f0] sm:$0xff]   ;;  %v1953_v23 = vld [vmem:[#allocation10 + $0x138] sm:$0xff]  }
  0xa9   :  { %1815 = vmatpush3.bf16.msra.mxu0 %v1929_v8  ;;  %v488_v44 = vrot.slane %v487_v38, 2  ;;  %v470_v6 = vrot.slane %v469_v37, 1  ;;  %v480_v52 = vrot.slane %v479_v41, 1  ;;  %v391_v17 = vadd.f32 %v390_v46, %v389_v15  ;;  %v1949_v10 = vld [vmem:[#allocation10 + $0x130] sm:$0xff]   ;;  %v1955_v43 = vld [vmem:[#allocation10 + $0x1b8] sm:$0xff]  }
  0xaa   :  { %1816 = vmatprep.subr.bf16.mxu0 %v1932_v13  ;;  %v495_v57 = vadd.f32 %v494_v16, %v341_v0  ;;  %v401_v22 = vadd.f32 %v400_v47, %v399_v18  ;;  %v411_v49 = vadd.f32 %v410_v51, %v409_v39  ;;  %v421_v63 = vadd.f32 %v420_v1, %v419_v25 }
  0xab   :  { %1837 = vmatpush3.bf16.msra.mxu1 %v1931_v19  ;;  %v489_v53 = vadd.f32 %v488_v44, %v487_v38  ;;  %v471_v28 = vadd.f32 %v470_v6, %v469_v37  ;;  %v481_v29 = vadd.f32 %v480_v52, %v479_v41  ;;  %v2111_v25 = vmov 0  }
  0xac   :  { %1838 = vmatprep.subr.bf16.mxu1 %v1934_v31  ;;  %v496_v54 = vrot.slane %v495_v57, 4  ;;  %v535_v62 = vcombine.low %v391_v17, %v401_v22  ;;  %v536_v26 = vcombine.low %v411_v49, %v421_v63  ;;  %v609_v31 = vld [vmem:[#allocation2] sm:$0xff]  ;;  %v1962_v49 = vld [vmem:[#allocation9 + $0x50] sm:$0xff]   ;;  %v1961_v63 = vld [vmem:[#allocation9 + $0x88] sm:$0xff]  }
  0xad   :  { %1817 = vmatpush3.bf16.msra.mxu0 %v1933_v24  ;;  %v490_v2 = vrot.slane %v489_v53, 1  ;;  %v569_v30 = vcombine.low %v471_v28, %v481_v29  ;;  %v1956_v24 = vld [vmem:[#allocation9 + $0x40] sm:$0xff]   ;;  %v1965_v28 = vld [vmem:[#allocation9 + $0x58] sm:$0xff]   ;;  %v1964_v29 = vld [vmem:[#allocation9 + $0x90] sm:$0xff]  }
  0xae   :  { %1818 = vmatprep.subr.bf16.mxu0 %v1936_v36  ;;  %v497_v11 = vadd.f32 %v496_v54, %v495_v57  ;;  %v543_v34 = vrot.slane %v535_v62, %v2197_v42  ;;  %v550_v35 = vrot.slane %v536_v26, %v2197_v42  ;;  %v610_v36 = vmul.f32 0.125, %v609_v31  ;;  %v1957_v54 = vld [vmem:[#allocation9] sm:$0xff]   ;;  %v1972_v62 = vld [vmem:[#allocation9 + $0x28] sm:$0xff]   ;;  %v1977_v26 = vld [vmem:[#allocation9 + $0x78] sm:$0xff]  }
  0xaf   :  { %1839 = vmatpush3.bf16.msra.mxu1 %v1935_v40  ;;  %v491_v4 = vadd.f32 %v490_v2, %v489_v53  ;;  %v577_v32 = vrot.slane %v569_v30, %v2197_v42  ;;  %v1966_v2 = vld [vmem:[#allocation9 + $0x18] sm:$0xff]   ;;  %v1976_v30 = vld [vmem:[#allocation9 + $0xb0] sm:$0xff]  }
  0xb0   :  { %1840 = vmatprep.subr.bf16.mxu1 %v1938_v61  ;;  %v498_v21 = vrot.slane %v497_v11, 2  ;;  %v551_v0 = vcombine.low %v543_v34, %v550_v35  ;;  %v611_v40 = vmax.f32 %v610_v36, 0.0 }
  0xb1   :  { %1819 = vmatpush3.bf16.msra.mxu0 %v1937_v48 }
  0xb2   :  { %1820 = vmatprep.subr.bf16.mxu0 %v1940_v45  ;;  %v499_v27 = vadd.f32 %v498_v21, %v497_v11  ;;  %v613_v44 = vcombine.high %v611_v40, %v611_v40  ;;  %v2363_v48 = vrot.slane %v611_v40, %v2197_v42  ;;  %v1968_v21 = vld [vmem:[#allocation9 + $0x60] sm:$0xff]  }
  0xb3   :  { %1841 = vmatpush3.bf16.msra.mxu1 %v1939_v5 }
  0xb4   :  { %1842 = vmatprep.subr.bf16.mxu1 %v1942_v7  ;;  %v500_v8 = vrot.slane %v499_v27, 1  ;;  %v2366_v57 = vrot.slane %v613_v44, %v2197_v42  ;;  %v628_v1 = vcombine.high %v2363_v48, %v2363_v48 }
  0xb5   :  { %1821 = vmatpush3.bf16.msra.mxu0 %v1941_v60  ;;  %v1959_v60 = vld [vmem:[#allocation9 + $0x48] sm:$0xff]  }
  0xb6   :  { %1822 = vmatprep.subr.bf16.mxu0 %v1944_v12  ;;  %v501_v13 = vadd.f32 %v500_v8, %v499_v27  ;;  %v629_v6 = vcombine.high %v2366_v57, %v2366_v57  ;;  %v1958_v12 = vld [vmem:[#allocation9 + $0x80] sm:$0xff]   ;;  %v635_v17 = vpack.c.bf16 %v628_v1, %v628_v1  ;;  %v1971_v27 = vld [vmem:[#allocation9 + $0x68] sm:$0xff]   ;;  %v1975_v8 = vld [vmem:[#allocation9 + $0x30] sm:$0xff]  }
  0xb7   :  { %1843 = vmatpush3.bf16.msra.mxu1 %v1943_v59  ;;  %v1963_v59 = vld [vmem:[#allocation9 + $0x10] sm:$0xff]  }
  0xb8   :  { %1844 = vmatprep.subr.bf16.mxu1 %v1946_v50  ;;  %v570_v19 = vcombine.low %v491_v4, %v501_v13  ;;  %v637_v22 = vpack.c.bf16 %v629_v6, %v629_v6  ;;  %v1967_v50 = vld [vmem:[#allocation9 + $0x98] sm:$0xff]   ;;  %v1973_v4 = vld [vmem:[#allocation9 + $0xa8] sm:$0xff]   ;;  %v634_v13 = vpack.c.bf16 %v2363_v48, %v2363_v48 }
  0xb9   :  { %1823 = vmatpush3.bf16.msra.mxu0 %v1945_v55  ;;  %v1969_v55 = vld [vmem:[#allocation9 + $0x20] sm:$0xff]  }
  0xba   :  { %1824 = vmatprep.subr.bf16.mxu0 %v1948_v56  ;;  %v584_v58 = vrot.slane %v570_v19, %v2197_v42  ;;  %v1970_v56 = vld [vmem:[#allocation9 + $0xa0] sm:$0xff]  }
  0xbb   :  { %1845 = vmatpush3.bf16.msra.mxu1 %v1947_v3  ;;  %v1974_v3 = vld [vmem:[#allocation9 + $0x70] sm:$0xff]  }
  0xbc   :  { %1846 = vmatprep.subr.bf16.mxu1 %v1950_v9  ;;  %v585_v38 = vcombine.low %v577_v32, %v584_v58  ;;  %v1978_v9 = vld [vmem:[#allocation9 + $0x38] sm:$0xff]  }
  0xbd   :  { %1825 = vmatpush3.bf16.msra.mxu0 %v1949_v10  ;;  %v1979_v10 = vld [vmem:[#allocation9 + $0xb8] sm:$0xff]  }
  0xbe   :  { %1826 = vmatprep.subr.bf16.mxu0 %v1952_v14  ;;  %v595_v15 = vrot.slane %v585_v38, 7  ;;  %v1980_v14 = vld [vmem:[#allocation9 + $0xc0] sm:$0xff]  }
  0xbf   :  { %1847 = vmatpush3.bf16.msra.mxu1 %v1951_v33  ;;  %v636_v33 = vpack.c.bf16 %v2366_v57, %v2366_v57 }
  0xc0   :  { %1848 = vmatprep.subr.bf16.mxu1 %v1954_v20  ;;  %v596_v18 = vsel %vm202_vm8, %v595_v15, %v551_v0 }
  0xc1   :  { %1827 = vmatpush3.bf16.msra.mxu0 %v1953_v23  ;;  %v597_v39 = vsel %vm204_vm9, %v595_v15, %v596_v18 }
  0xc2   :  { %1856 = vmatprep.subr.bf16.mxu0 %v1956_v24  ;;  %v598_v37 = vsel %vm206_vm10, %v595_v15, %v597_v39 }
  0xc3   :  { %1849 = vmatpush3.bf16.msra.mxu1 %v1955_v43  ;;  %v599_v41 = vsel %vm208_vm11, %v595_v15, %v598_v37 }
  0xc4   :  { %1611 = vmatprep.subr.bf16.mxu1 %v2111_v25  ;;  %v641_v16 = vmul.f32 0.025, %v599_v41 }
  0xc6   :  { %v643_v61 = vmax.f32 %v641_v16, 0.0 }
  0xc8   :  { %v670_v45 = vrot.slane %v643_v61, %v2197_v42  ;;  %v663_v46 = vcombine.high %v643_v61, %v643_v61 }
  0xca   :  { %v678_v47 = vcombine.high %v670_v45, %v670_v45  ;;  %v677_v51 = vrot.slane %v663_v46, %v2197_v42  ;;  %v692_v5 = vpack.c.bf16 %v670_v45, %v670_v45  ;;  %v1960_v42 = vld [vmem:[#allocation9 + $0x8] sm:$0xff]  }
  0xcc   :  { %v693_v52 = vpack.c.bf16 %v678_v47, %v678_v47  ;;  %v679_v53 = vcombine.high %v677_v51, %v677_v51  ;;  %v694_v7 = vpack.c.bf16 %v677_v51, %v677_v51 }
  0xce   :  { %1370 = vmatprep.mubr.bf16.mxu0 %v693_v52  ;;  %v695_v11 = vpack.c.bf16 %v679_v53, %v679_v53 }
  0xcf   :  { %1371 = vmatmul.mubr.bf16.vlgmr.msra.gmra.mrb[4].mxu0 %v692_v5  ;;  %v1767_v5 = vld [vmem:[%s2406_s4] ss:$0 sm:$0xff] }
  0xd0   :  { %1410 = vmatprep.mubr.bf16.mxu1 %v695_v11  ;;  %1857 = vmatpush3.bf16.msra.mxu0 %v1957_v54 }
  0xd1   :  { %1411 = vmatmul.mubr.bf16.vlgmr.msra.gmra.mrb[4].mxu1 %v694_v7  ;;  %1858 = vmatprep.subr.bf16.mxu0 %v1959_v60 }
  0xd2   :  { %1612 = vmatpush1.bf16.msra.mxu1 %v1958_v12  ;;  %1603 = vmatprep.mubr.bf16.mxu0 %v635_v17 }
  0xd3   :  { %1613 = vmatprep.subr.bf16.mxu1 %v2111_v25  ;;  %1766 = vmatprep.mubr.msk.bf16.mxu1 %vm122_vm7, %v637_v22 }
  0xd4   :  { %1859 = vmatpush3.bf16.msra.mxu0 %v1960_v42 }
  0xd5   :  { %1860 = vmatprep.subr.bf16.mxu0 %v1962_v49 }
  0xd6   :  { %1614 = vmatpush1.bf16.msra.mxu1 %v1961_v63 }
  0xd7   :  { %1615 = vmatprep.subr.bf16.mxu1 %v2111_v25 }
  0xd8   :  { %1861 = vmatpush3.bf16.msra.mxu0 %v1963_v59 }
  0xd9   :  { %1862 = vmatprep.subr.bf16.mxu0 %v1965_v28 }
  0xda   :  { %1616 = vmatpush1.bf16.msra.mxu1 %v1964_v29 }
  0xdb   :  { %1617 = vmatprep.subr.bf16.mxu1 %v2111_v25 }
  0xdc   :  { %1863 = vmatpush3.bf16.msra.mxu0 %v1966_v2 }
  0xdd   :  { %1864 = vmatprep.subr.bf16.mxu0 %v1968_v21 }
  0xde   :  { %1618 = vmatpush1.bf16.msra.mxu1 %v1967_v50 }
  0xdf   :  { %1619 = vmatprep.subr.bf16.mxu1 %v2111_v25 }
  0xe0   :  { %1865 = vmatpush3.bf16.msra.mxu0 %v1969_v55 }
  0xe1   :  { %1866 = vmatprep.subr.bf16.mxu0 %v1971_v27 }
  0xe2   :  { %1620 = vmatpush1.bf16.msra.mxu1 %v1970_v56 }
  0xe3   :  { %1621 = vmatprep.subr.bf16.mxu1 %v2111_v25 }
  0xe4   :  { %1867 = vmatpush3.bf16.msra.mxu0 %v1972_v62 }
  0xe5   :  { %1868 = vmatprep.subr.bf16.mxu0 %v1974_v3 }
  0xe6   :  { %1622 = vmatpush1.bf16.msra.mxu1 %v1973_v4 }
  0xe7   :  { %1623 = vmatprep.subr.bf16.mxu1 %v2111_v25 }
  0xe8   :  { %1869 = vmatpush3.bf16.msra.mxu0 %v1975_v8 }
  0xe9   :  { %1870 = vmatprep.subr.bf16.mxu0 %v1977_v26 }
  0xea   :  { %1624 = vmatpush1.bf16.msra.mxu1 %v1976_v30 }
  0xeb   :  { %1625 = vmatprep.subr.bf16.mxu1 %v2111_v25 }
  0xec   :  { %1871 = vmatpush3.bf16.msra.mxu0 %v1978_v9 }
  0xee   :  { %1626 = vmatpush1.bf16.msra.mxu1 %v1979_v10 }
  0xef   :  { %1604 = vmatmul.mubr.bf16.vlgmr.msra.gmra.mrb[8].mxu0 %v634_v13  ;;  %1627 = vmatprep.subr.bf16.mxu1 %v2111_v25 }
  0xf2   :  { %1628 = vmatpush1.bf16.msra.mxu1 %v1980_v14 }
  0xf5   :  { %1644 = vmatmul.mubr.bf16.vlgmr.msra.gmra.mrb[8].mxu1 %v636_v33 }
 0x177   :  { %v1784_v34 = vpop.f32.mrb[0].mxu0 }
 0x178   :  { %v1785_v35 = vpop.f32.mrb[1].mxu0 }
 0x179   :  { %v1786_v19 = vadd.f32 %v1785_v35, %v1784_v34  ;;  %v1787_v32 = vpop.f32.mrb[2].mxu0  ;;  %v1806_v20 = vpop.f32.mrb[0].mxu1 }
 0x17a   :  { %v1788_v23 = vpop.f32.mrb[3].mxu0  ;;  %v1807_v58 = vpop.f32.mrb[1].mxu1 }
 0x17b   :  { %v1808_v31 = vadd.f32 %v1807_v58, %v1806_v20  ;;  %v1809_v24 = vpop.f32.mrb[2].mxu1 }
 0x17c   :  { %v1810_v0 = vpop.f32.mrb[3].mxu1 }
 0x17d   :  { %v1333_v38 = vadd.f32 %v1808_v31, %v1786_v19 }
 0x1a2   :  { %v1828_v43 = vpop.f32.mrb[4].mxu0 }
 0x1a3   :  { %v1829_v36 = vpop.f32.mrb[5].mxu0 }
 0x1a4   :  { %v1830_v15 = vadd.f32 %v1829_v36, %v1828_v43  ;;  %v1831_v18 = vpop.f32.mrb[6].mxu0  ;;  %v1850_v39 = vpop.f32.mrb[4].mxu1 }
 0x1a5   :  { %v1832_v25 = vpop.f32.mrb[7].mxu0  ;;  %v1851_v40 = vpop.f32.mrb[5].mxu1 }
 0x1a6   :  { %v1373_v37 = vadd.f32 %v1830_v15, %v1333_v38  ;;  %v1852_v41 = vadd.f32 %v1851_v40, %v1850_v39  ;;  %v1853_v44 = vpop.f32.mrb[6].mxu1 }
 0x1a7   :  { %v1854_v16 = vpop.f32.mrb[7].mxu1 }
 0x1a8   :  { %v1413_v61 = vadd.f32 %v1852_v41, %v1373_v37 }
 0x1c2   :  { %v1872_v48 = vpop.f32.mrb[8].mxu0 }
 0x1c3   :  { %v1873_v57 = vpop.f32.mrb[9].mxu0 }
 0x1c4   :  { %v1874_v45 = vadd.f32 %v1873_v57, %v1872_v48  ;;  %v1875_v46 = vpop.f32.mrb[10].mxu0 }
 0x1c5   :  { %v1876_v47 = vpop.f32.mrb[11].mxu0 }
 0x1c6   :  { %v1606_v51 = vadd.f32 %v1874_v45, %v1413_v61 }
 0x1c8   :  { %v1645_v1 = vpop.f32.mrb[8].mxu1 }
 0x1c9   :  { %v1646_v6 = vadd.f32 %v1645_v1, %v1606_v51  ;;  %v1647_v52 = vpop.f32.mrb[9].mxu1 }
 0x1ca   :  { %v1648_v53 = vpop.f32.mrb[10].mxu1 }
 0x1cb   :  { %v1658_v54 = vadd.f32 %v1767_v5, %v1646_v6  ;;  %v1649_v7 = vpop.f32.mrb[11].mxu1 }
 0x1cd   :  { %1659 = vst [vmem:[#allocation12] sm:$0x3] %v1658_v54 }
 0x1ce   :  { %2080 = shalt.err (!%p2077_p8)
}
 0x1cf   :  { %s2081_s4 = scalar_lea.hbm %s2407_s5, 32 }
 0x1d0   :  { %p2082_p9 = scmp.ne.s32.totalorder %s2407_s5, %s2081_s4  ;;  %p2085_p10 = scmp.lt.u32.totalorder %s2081_s4, %s2407_s5 }
 0x1d2   :  { %p2087_p11 = pnand %p2085_p10, %p2082_p9 }
 0x1d4   :  { %2090 = shalt.err (!%p2087_p11)
}
 0x1d5   :  { %1669 = dma.vmem_to_hbm [thread:$0]  %s1667_s20, 32, %s2407_s5, [#allocation6]  }
 0x1d6   :  { %2097 = dma.done.wait [#allocation6], 32  }
 0x1d7   :  { %2098 = vsyncadd [#allocation6], 4294967264 }
 0x1d8   :  { %1673 = vsyncpa [#allocation5], 1 }
 0x1d9   :  { %1674 = vsyncpa [#allocation8], 1 }
 0x1da   :  { %1675 = vsyncpa [#allocation11], 1 }
 0x1db   :  { %1676 = vsyncpa [#allocation6], 1 }

</bundles_post_ra>
